<compile_context>
chip_gen: v7x
topology: tpu7x:2x2x1
jax: 0.10.0
libtpu: 0.0.40
codegen_flags: <defaults>
</compile_context>

<pallas_src>
import jax
import jax.numpy as jnp
from jax import lax
from jax.experimental import pallas as pl
from jax.experimental.pallas import tpu as pltpu


def _round_up(x, m):
    return (x + m - 1) // m * m


def _elu(v, alpha=0.2):
    # nn.ELU(alpha=0.2): v if v > 0 else alpha * (exp(v) - 1)
    return jnp.where(v > 0, v, alpha * (jnp.exp(v) - 1.0))


def discriminator_kernel(x_ref,
                         w1_ref, b1_ref,
                         w2_ref, b2_ref,
                         w3_ref, b3_ref,
                         w4_ref, b4_ref,
                         o_ref):
    # x arrives f32 straight from HBM; cast to bf16 on the VPU (free filler under the DMA)
    # right before the MXU.  Accumulation / bias / ELU math stays f32 (v5e-safe).
    x = x_ref[...].astype(jnp.bfloat16)

    # fc1 + ELU(0.2)   (Dropout(0.3) = identity in eval mode)
    h = jnp.dot(x, w1_ref[...], preferred_element_type=jnp.float32) + b1_ref[...]
    h = _elu(h)
    # TODO(synk): training-mode Dropout(0.3) not implemented (inference semantics used)

    # fc2 + ELU(0.2)
    h = jnp.dot(h.astype(jnp.bfloat16), w2_ref[...],
                preferred_element_type=jnp.float32) + b2_ref[...]
    h = _elu(h)

    # fc3 + ELU(0.2)
    h = jnp.dot(h.astype(jnp.bfloat16), w3_ref[...],
                preferred_element_type=jnp.float32) + b3_ref[...]
    h = _elu(h)

    # fc4 (out_features == 1): contract H4 with the (1, H4) weight row as the LHS so the result
    # is a lane-dense (1, tile_b) row -> unmasked stores into the lane-dense output block.
    logits = lax.dot_general(
        w4_ref[...], h.astype(jnp.bfloat16),
        dimension_numbers=(((1,), (1,)), ((), ())),
        preferred_element_type=jnp.float32) + b4_ref[...]

    # sigmoid: exp + approximate reciprocal on the EUP (separate VLIW slot from VPU/MXU).
    o_ref[...] = pl.reciprocal(1.0 + jnp.exp(-logits), approx=True)


def discriminator_forward(x, params, *, tile_b=None):
    """x: (B, data_dim) float32; params: dict of (in, out) weights and (1, out) biases."""
    B, data_dim = x.shape
    H = params["w1"].shape[1]
    H2 = params["w2"].shape[1]
    H4 = params["w3"].shape[1]

    # Batch tile: multiple of 8.  Small batches -> one tile; larger batches -> at least 2 grid
    # steps (so v7x can shard the "parallel" axis across its two TensorCores), capped at 1024
    # rows so tile + resident weights fit v7x's 64 MiB VMEM with headroom (v5e/v6e have 128 MiB).
    if tile_b is None:
        if B <= 256:
            tile_b = _round_up(B, 8)
        else:
            tile_b = min(1024, _round_up(pl.cdiv(B, 2), 128))
    tile_b = _round_up(tile_b, 8)

    B_pad = _round_up(B, tile_b)
    x_p = x.astype(jnp.float32)
    if B_pad != B:
        x_p = jnp.pad(x_p, ((0, B_pad - B), (0, 0)))
    num_tiles = B_pad // tile_b

    # bf16 for MXU operands; f32 for everything touched by the VPU/EUP.
    w1_bf = params["w1"].astype(jnp.bfloat16)
    w2_bf = params["w2"].astype(jnp.bfloat16)
    w3_bf = params["w3"].astype(jnp.bfloat16)
    w4_bf = params["w4"].reshape(1, H4).astype(jnp.bfloat16)   # (1, H/4) row
    b1 = params["b1"].astype(jnp.float32)
    b2 = params["b2"].astype(jnp.float32)
    b3 = params["b3"].astype(jnp.float32)
    b4 = params["b4"].reshape(1, 1).astype(jnp.float32)

    # Resident weights/biases: constant block index + single buffer (no pointless double-buffer).
    def resident(shape):
        return pl.BlockSpec(shape, lambda i: (0, 0), pipeline_mode=pl.Buffered(1))

    # VMEM budget: single-buffered weights + double-buffered f32 x/out tiles + live activations.
    weight_bytes = ((w1_bf.size + w2_bf.size + w3_bf.size + w4_bf.size) * 2
                    + (b1.size + b2.size + b3.size + b4.size) * 4)
    tile_bytes = tile_b * (data_dim * 4 * 2               # double-buffered f32 input tile
                           + 4 * 2                        # double-buffered f32 output row
                           + (H + H2 + H4) * 4            # live f32 activations
                           + (data_dim + H + H2 + H4) * 2)  # bf16 MXU-side copies
    vmem_limit = int(min(48 * 1024 * 1024,
                         max(16 * 1024 * 1024, 2 * (weight_bytes + tile_bytes))))

    flops = 2 * B_pad * (data_dim * H + H * H2 + H2 * H4 + H4)
    transcendentals = B_pad * (H + H2 + H4 + 2)
    bytes_accessed = x_p.size * 4 + weight_bytes + B_pad * 4

    out = pl.pallas_call(
        discriminator_kernel,
        out_shape=jax.ShapeDtypeStruct((num_tiles, tile_b), jnp.float32),
        grid_spec=pltpu.PrefetchScalarGridSpec(
            num_scalar_prefetch=0,
            grid=(num_tiles,),
            in_specs=[
                pl.BlockSpec((tile_b, data_dim), lambda i: (i, 0)),   # x: f32, batch-tiled
                resident((data_dim, H)), resident((1, H)),
                resident((H, H2)),       resident((1, H2)),
                resident((H2, H4)),      resident((1, H4)),
                resident((1, H4)),       resident((1, 1)),
            ],
            out_specs=pl.BlockSpec((1, tile_b), lambda i: (i, 0)),    # lane-dense sigmoid row
        ),
        compiler_params=pltpu.CompilerParams(
            dimension_semantics=("parallel",),
            vmem_limit_bytes=vmem_limit,
        ),
        cost_estimate=pl.CostEstimate(
            flops=int(flops),
            transcendentals=int(transcendentals),
            bytes_accessed=int(bytes_accessed),
        ),
    )(x_p, w1_bf, b1, w2_bf, b2, w3_bf, b3, w4_bf, b4)

    return out.reshape(B_pad, 1)[:B]


def init_params(key, data_dim, hidden_size):
    """Deterministic PyTorch-style (uniform +/- 1/sqrt(fan_in)) init.
    Weights created as (out, in) like nn.Linear, then transposed to (in, out)."""
    dims = [data_dim, hidden_size, hidden_size // 2, hidden_size // 4, 1]
    params = {}
    for i in range(4):
        fan_in, fan_out = dims[i], dims[i + 1]
        key, kw, kb = jax.random.split(key, 3)
        bound = 1.0 / jnp.sqrt(jnp.float32(fan_in))
        w = jax.random.uniform(kw, (fan_out, fan_in), jnp.float32, -bound, bound)
        b = jax.random.uniform(kb, (fan_out,), jnp.float32, -bound, bound)
        params[f"w{i+1}"] = w.T                       # (in, out)
        params[f"b{i+1}"] = b.reshape(1, fan_out)     # (1, out) for broadcast
    return params


def reference_forward(x, params):
    """Pure-JAX f32 reference for a sanity check."""
    h = _elu(x @ params["w1"] + params["b1"])
    h = _elu(h @ params["w2"] + params["b2"])
    h = _elu(h @ params["w3"] + params["b3"])
    return jax.nn.sigmoid(h @ params["w4"] + params["b4"])


if __name__ == "__main__":
    data_dim = 16
    hidden_size = 32
    batch = 8

    key = jax.random.PRNGKey(0)
    key, kx = jax.random.split(key)
    x = jax.random.normal(kx, (batch, data_dim), jnp.float32)
    params = init_params(key, data_dim, hidden_size)

    out = discriminator_forward(x, params)
    out = jax.block_until_ready(out)

    ref = reference_forward(x, params)
    assert out.shape == (batch, 1), out.shape
    # bf16 MXU inputs + approximate EUP reciprocal -> loosened tolerance vs the f32 reference.
    assert jnp.allclose(out, ref, atol=2e-2, rtol=2e-2), (out, ref)

    print("KERNEL_OK")
</pallas_src>

<mosaic_0001>
module attributes {stable_mosaic.version = 11 : i64} {
  func.func @discriminator_kernel(%arg0: i32, %arg1: memref<8x16xf32, #tpu.memory_space<vmem>>, %arg2: memref<16x32xbf16, #tpu.memory_space<vmem>>, %arg3: memref<1x32xf32, #tpu.memory_space<vmem>>, %arg4: memref<32x16xbf16, #tpu.memory_space<vmem>>, %arg5: memref<1x16xf32, #tpu.memory_space<vmem>>, %arg6: memref<16x8xbf16, #tpu.memory_space<vmem>>, %arg7: memref<1x8xf32, #tpu.memory_space<vmem>>, %arg8: memref<1x8xbf16, #tpu.memory_space<vmem>>, %arg9: memref<1x1xf32, #tpu.memory_space<vmem>>, %arg10: memref<1x8xf32, #tpu.memory_space<vmem>>) attributes {dimension_semantics = [#tpu.dimension_semantics<parallel>], iteration_bounds = array<i64: 1>, scalar_prefetch = 0 : i64, scratch_operands = 0 : i64, tpu.core_type = #tpu.core_type<tc>, window_params = [{transform_indices = @transform_0, window_bounds = array<i64: 8, 16>}, {pipeline_mode = #tpu.pipeline_mode<synchronous>, transform_indices = @transform_1, window_bounds = array<i64: 16, 32>}, {pipeline_mode = #tpu.pipeline_mode<synchronous>, transform_indices = @transform_2, window_bounds = array<i64: 1, 32>}, {pipeline_mode = #tpu.pipeline_mode<synchronous>, transform_indices = @transform_3, window_bounds = array<i64: 32, 16>}, {pipeline_mode = #tpu.pipeline_mode<synchronous>, transform_indices = @transform_4, window_bounds = array<i64: 1, 16>}, {pipeline_mode = #tpu.pipeline_mode<synchronous>, transform_indices = @transform_5, window_bounds = array<i64: 16, 8>}, {pipeline_mode = #tpu.pipeline_mode<synchronous>, transform_indices = @transform_6, window_bounds = array<i64: 1, 8>}, {pipeline_mode = #tpu.pipeline_mode<synchronous>, transform_indices = @transform_7, window_bounds = array<i64: 1, 8>}, {pipeline_mode = #tpu.pipeline_mode<synchronous>, transform_indices = @transform_8, window_bounds = array<i64: 1, 1>}, {transform_indices = @transform_9, window_bounds = array<i64: 1, 8>}]} {
    %c0 = arith.constant 0 : index
    %c0_0 = arith.constant 0 : index
    %0 = vector.load %arg1[%c0, %c0_0] : memref<8x16xf32, #tpu.memory_space<vmem>>, vector<8x16xf32>
    %1 = arith.truncf %0 : vector<8x16xf32> to vector<8x16xbf16>
    %c0_1 = arith.constant 0 : index
    %c0_2 = arith.constant 0 : index
    %2 = vector.load %arg2[%c0_1, %c0_2] : memref<16x32xbf16, #tpu.memory_space<vmem>>, vector<16x32xbf16>
    %cst = arith.constant dense<0.000000e+00> : vector<8x32xf32>
    %3 = tpu.matmul %1, %2, %cst {dimension_numbers = #tpu.dot_dimension_numbers<[1], [0], [0], [1], [0, 0, 1, 1], [], []>} : vector<8x16xbf16>, vector<16x32xbf16>, vector<8x32xf32> -> vector<8x32xf32>
    %c0_3 = arith.constant 0 : index
    %c0_4 = arith.constant 0 : index
    %4 = vector.load %arg3[%c0_3, %c0_4] : memref<1x32xf32, #tpu.memory_space<vmem>>, vector<1x32xf32>
    %5 = vector.broadcast %4 : vector<1x32xf32> to vector<8x32xf32>
    %6 = arith.addf %3, %5 : vector<8x32xf32>
    %cst_5 = arith.constant 0.000000e+00 : f32
    %7 = vector.broadcast %cst_5 : f32 to vector<8x32xf32>
    %8 = arith.cmpf ogt, %6, %7 : vector<8x32xf32>
    %9 = math.exp %6 : vector<8x32xf32>
    %cst_6 = arith.constant 1.000000e+00 : f32
    %10 = vector.broadcast %cst_6 : f32 to vector<8x32xf32>
    %11 = arith.subf %9, %10 : vector<8x32xf32>
    %cst_7 = arith.constant 2.000000e-01 : f32
    %12 = vector.broadcast %cst_7 : f32 to vector<8x32xf32>
    %13 = arith.mulf %12, %11 : vector<8x32xf32>
    %14 = arith.select %8, %6, %13 : vector<8x32xi1>, vector<8x32xf32>
    %15 = arith.truncf %14 : vector<8x32xf32> to vector<8x32xbf16>
    %c0_8 = arith.constant 0 : index
    %c0_9 = arith.constant 0 : index
    %16 = vector.load %arg4[%c0_8, %c0_9] : memref<32x16xbf16, #tpu.memory_space<vmem>>, vector<32x16xbf16>
    %cst_10 = arith.constant dense<0.000000e+00> : vector<8x16xf32>
    %17 = tpu.matmul %15, %16, %cst_10 {dimension_numbers = #tpu.dot_dimension_numbers<[1], [0], [0], [1], [0, 0, 1, 1], [], []>} : vector<8x32xbf16>, vector<32x16xbf16>, vector<8x16xf32> -> vector<8x16xf32>
    %c0_11 = arith.constant 0 : index
    %c0_12 = arith.constant 0 : index
    %18 = vector.load %arg5[%c0_11, %c0_12] : memref<1x16xf32, #tpu.memory_space<vmem>>, vector<1x16xf32>
    %19 = vector.broadcast %18 : vector<1x16xf32> to vector<8x16xf32>
    %20 = arith.addf %17, %19 : vector<8x16xf32>
    %cst_13 = arith.constant 0.000000e+00 : f32
    %21 = vector.broadcast %cst_13 : f32 to vector<8x16xf32>
    %22 = arith.cmpf ogt, %20, %21 : vector<8x16xf32>
    %23 = math.exp %20 : vector<8x16xf32>
    %cst_14 = arith.constant 1.000000e+00 : f32
    %24 = vector.broadcast %cst_14 : f32 to vector<8x16xf32>
    %25 = arith.subf %23, %24 : vector<8x16xf32>
    %cst_15 = arith.constant 2.000000e-01 : f32
    %26 = vector.broadcast %cst_15 : f32 to vector<8x16xf32>
    %27 = arith.mulf %26, %25 : vector<8x16xf32>
    %28 = arith.select %22, %20, %27 : vector<8x16xi1>, vector<8x16xf32>
    %29 = arith.truncf %28 : vector<8x16xf32> to vector<8x16xbf16>
    %c0_16 = arith.constant 0 : index
    %c0_17 = arith.constant 0 : index
    %30 = vector.load %arg6[%c0_16, %c0_17] : memref<16x8xbf16, #tpu.memory_space<vmem>>, vector<16x8xbf16>
    %cst_18 = arith.constant dense<0.000000e+00> : vector<8x8xf32>
    %31 = tpu.matmul %29, %30, %cst_18 {dimension_numbers = #tpu.dot_dimension_numbers<[1], [0], [0], [1], [0, 0, 1, 1], [], []>} : vector<8x16xbf16>, vector<16x8xbf16>, vector<8x8xf32> -> vector<8x8xf32>
    %c0_19 = arith.constant 0 : index
    %c0_20 = arith.constant 0 : index
    %32 = vector.load %arg7[%c0_19, %c0_20] : memref<1x8xf32, #tpu.memory_space<vmem>>, vector<1x8xf32>
    %33 = vector.broadcast %32 : vector<1x8xf32> to vector<8x8xf32>
    %34 = arith.addf %31, %33 : vector<8x8xf32>
    %cst_21 = arith.constant 0.000000e+00 : f32
    %35 = vector.broadcast %cst_21 : f32 to vector<8x8xf32>
    %36 = arith.cmpf ogt, %34, %35 : vector<8x8xf32>
    %37 = math.exp %34 : vector<8x8xf32>
    %cst_22 = arith.constant 1.000000e+00 : f32
    %38 = vector.broadcast %cst_22 : f32 to vector<8x8xf32>
    %39 = arith.subf %37, %38 : vector<8x8xf32>
    %cst_23 = arith.constant 2.000000e-01 : f32
    %40 = vector.broadcast %cst_23 : f32 to vector<8x8xf32>
    %41 = arith.mulf %40, %39 : vector<8x8xf32>
    %42 = arith.select %36, %34, %41 : vector<8x8xi1>, vector<8x8xf32>
    %c0_24 = arith.constant 0 : index
    %c0_25 = arith.constant 0 : index
    %43 = vector.load %arg8[%c0_24, %c0_25] : memref<1x8xbf16, #tpu.memory_space<vmem>>, vector<1x8xbf16>
    %44 = arith.truncf %42 : vector<8x8xf32> to vector<8x8xbf16>
    %cst_26 = arith.constant dense<0.000000e+00> : vector<1x8xf32>
    %45 = tpu.matmul %43, %44, %cst_26 {dimension_numbers = #tpu.dot_dimension_numbers<[1], [1], [0], [0], [0, 0, 1, 0], [], []>} : vector<1x8xbf16>, vector<8x8xbf16>, vector<1x8xf32> -> vector<1x8xf32>
    %c0_27 = arith.constant 0 : index
    %c0_28 = arith.constant 0 : index
    %46 = vector.load %arg9[%c0_27, %c0_28] : memref<1x1xf32, #tpu.memory_space<vmem>>, vector<1x1xf32>
    %47 = vector.broadcast %46 : vector<1x1xf32> to vector<1x8xf32>
    %48 = arith.addf %45, %47 : vector<1x8xf32>
    %cst_29 = arith.constant 0.000000e+00 : f32
    %49 = vector.broadcast %cst_29 : f32 to vector<1x8xf32>
    %50 = arith.subf %49, %48 : vector<1x8xf32>
    %51 = math.exp %50 : vector<1x8xf32>
    %cst_30 = arith.constant 1.000000e+00 : f32
    %52 = vector.broadcast %cst_30 : f32 to vector<1x8xf32>
    %53 = arith.addf %52, %51 : vector<1x8xf32>
    %54 = tpu.reciprocal %53 {approx = true} : vector<1x8xf32> -> vector<1x8xf32>
    %c0_31 = arith.constant 0 : index
    %c0_32 = arith.constant 0 : index
    %55 = vector.load %arg10[%c0_31, %c0_32] : memref<1x8xf32, #tpu.memory_space<vmem>>, vector<1x8xf32>
    tpu.vector_store %arg10[%c0_31, %c0_32], %54 {strides = array<i32>} : memref<1x8xf32, #tpu.memory_space<vmem>>, vector<1x8xf32>,
    return
  }
  func.func @transform_0(%arg0: i32) -> (i32, i32) {
    %c0_i32 = arith.constant 0 : i32
    %c0_i32_0 = arith.constant 0 : i32
    return %arg0, %c0_i32 : i32, i32
  }
  func.func @transform_1(%arg0: i32) -> (i32, i32) {
    %c0_i32 = arith.constant 0 : i32
    %c0_i32_0 = arith.constant 0 : i32
    %c0_i32_1 = arith.constant 0 : i32
    return %c0_i32, %c0_i32_0 : i32, i32
  }
  func.func @transform_2(%arg0: i32) -> (i32, i32) {
    %c0_i32 = arith.constant 0 : i32
    %c0_i32_0 = arith.constant 0 : i32
    %c0_i32_1 = arith.constant 0 : i32
    return %c0_i32, %c0_i32_0 : i32, i32
  }
  func.func @transform_3(%arg0: i32) -> (i32, i32) {
    %c0_i32 = arith.constant 0 : i32
    %c0_i32_0 = arith.constant 0 : i32
    %c0_i32_1 = arith.constant 0 : i32
    return %c0_i32, %c0_i32_0 : i32, i32
  }
  func.func @transform_4(%arg0: i32) -> (i32, i32) {
    %c0_i32 = arith.constant 0 : i32
    %c0_i32_0 = arith.constant 0 : i32
    %c0_i32_1 = arith.constant 0 : i32
    return %c0_i32, %c0_i32_0 : i32, i32
  }
  func.func @transform_5(%arg0: i32) -> (i32, i32) {
    %c0_i32 = arith.constant 0 : i32
    %c0_i32_0 = arith.constant 0 : i32
    %c0_i32_1 = arith.constant 0 : i32
    return %c0_i32, %c0_i32_0 : i32, i32
  }
  func.func @transform_6(%arg0: i32) -> (i32, i32) {
    %c0_i32 = arith.constant 0 : i32
    %c0_i32_0 = arith.constant 0 : i32
    %c0_i32_1 = arith.constant 0 : i32
    return %c0_i32, %c0_i32_0 : i32, i32
  }
  func.func @transform_7(%arg0: i32) -> (i32, i32) {
    %c0_i32 = arith.constant 0 : i32
    %c0_i32_0 = arith.constant 0 : i32
    %c0_i32_1 = arith.constant 0 : i32
    return %c0_i32, %c0_i32_0 : i32, i32
  }
  func.func @transform_8(%arg0: i32) -> (i32, i32) {
    %c0_i32 = arith.constant 0 : i32
    %c0_i32_0 = arith.constant 0 : i32
    %c0_i32_1 = arith.constant 0 : i32
    return %c0_i32, %c0_i32_0 : i32, i32
  }
  func.func @transform_9(%arg0: i32) -> (i32, i32) {
    %c0_i32 = arith.constant 0 : i32
    %c0_i32_0 = arith.constant 0 : i32
    return %arg0, %c0_i32 : i32, i32
  }
}

</mosaic_0001>

<bundles_post_ra>
// kernel: tpu_custom_call.1
= control target key start
LH: loop header
LB: loop body
LE: loop exit
PB: predicated region body
PF: predicated region fallthrough
CT: control target
= control target key end

     0   :  { %s516_s0 = inlined_call_operand.vmem [shape: f32[8,16], index: 0, kind: input, shape index: {}]   ;;  %s517_s1 = inlined_call_operand.vmem [shape: bf16[16,32], index: 1, kind: input, shape index: {}]   ;;  %s518_s2 = inlined_call_operand.vmem [shape: f32[1,32], index: 2, kind: input, shape index: {}]   ;;  %s519_s3 = inlined_call_operand.vmem [shape: bf16[32,16], index: 3, kind: input, shape index: {}]   ;;  %s520_s4 = inlined_call_operand.vmem [shape: f32[1,16], index: 4, kind: input, shape index: {}]   ;;  %s521_s5 = inlined_call_operand.vmem [shape: bf16[16,8], index: 5, kind: input, shape index: {}]   ;;  %s522_s6 = inlined_call_operand.vmem [shape: f32[1,8], index: 6, kind: input, shape index: {}]   ;;  %s523_s7 = inlined_call_operand.vmem [shape: bf16[1,8], index: 7, kind: input, shape index: {}]   ;;  %s524_s8 = inlined_call_operand.<no memory space> [shape: f32[1,1], index: 8, kind: input, shape index: {}]   ;;  %s525_s9 = inlined_call_operand.hbm [shape: f32[1,8], index: 9, kind: output, shape index: {}]  }
   0x1   :  { %v14_v0 = vstv %s524_s8 }
   0x2   :  { %15 = vst [vmem:[#allocation2] sm:$0x1] %v14_v0 }
   0x3   :  { %v376_v1 = vld [vmem:[%s517_s1] sm:$0xff]   ;;  %v414_v2 = vmov 0.0   ;;  %vm53_vm0 = vcmask 130048   ;;  %vm415_vm1 = vmmov 0  }
   0x4   :  { %345 = vmatprep.subr.bf16.mxu0 %v414_v2  ;;  %v36_v3 = vld [vmem:[%s516_s0] sm:$0xff]  ;;  %351 = vmatprep.subr.bf16.mxu1 %v414_v2 }
   0x5   :  { %346 = vmatpush3.bf16.msra.mxu0 %v376_v1  ;;  %347 = vmatprep.mubr.msk.bf16.mxu0 %vm415_vm1, %v414_v2  ;;  %v37_v4 = vpack.c.bf16 %v36_v3, %v36_v3 }
   0x6   :  { %355 = vmatprep.mubr.msk.bf16.mxu1 %vm415_vm1, %v414_v2  ;;  %359 = vmatprep.subr.bf16.mxu0 %v414_v2 }
   0x7   :  { %16 = vsyncpa [#allocation4], 0  ;;  %v377_v5 = vld [vmem:[%s519_s3] sm:$0xff]   ;;  %v378_v6 = vld [vmem:[%s519_s3 + $0x8] sm:$0xff]   ;;  %vm127_vm3 = vcmask 261120   ;;  %v416_v33 = vmov 0   ;;  %v250_v48 = vlaneseq }
   0x8   :  { %348 = vmatmul.mubr.msk.bf16.vlgmr.msra.gmra.mrb[0].mxu0 %vm53_vm0, %v37_v4  ;;  %352 = vmatpush3.bf16.msra.mxu1 %v377_v5  ;;  %v322_v7 = vld [vmem:[%s518_s2] ss:$0 sm:$0xff]  ;;  %vm254_vm6 = vcmask 64512   ;;  %vm306_vm7 = vcmask 57344  }
   0x9   :  { %361 = vmatprep.mubr.msk.bf16.mxu0 %vm415_vm1, %v414_v2  ;;  %353 = vmatprep.subr.bf16.mxu1 %v414_v2  ;;  %v379_v19 = vld [vmem:[%s521_s5] sm:$0xff]   ;;  %v251_v49 = vshrl.u32 %v250_v48, 7 }
   0xa   :  { %360 = vmatpush3.bf16.msra.mxu0 %v379_v19  ;;  %v326_v20 = vld [vmem:[%s520_s4] ss:$0 sm:$0xff]  ;;  %375 = vset.pattern.permute.xlu0 %v416_v33 }
   0xb   :  { %v244_v32 = vld [vmem:[#allocation2] sm:$0x1]  ;;  %v252_v50 = vsub.s32 0, %v251_v49 }
   0xc   :  { %354 = vmatpush3.bf16.msra.mxu1 %v378_v6  ;;  %247 = vperm.xlu0 %375, %v244_v32   ;;  %v331_v34 = vld [vmem:[%s522_s6] ss:$0 sm:$0xff]  ;;  %s417_s6 = smov [#allocation3]  }
   0xd   :  { %365 = vmatprep.subr.bf16.mxu1 %v414_v2  ;;  %v242_v47 = vld [vmem:[%s523_s7] sm:$0x1]  ;;  %s314_s22 = sshll.u32 %s417_s6, 4  ;;  %s315_s22 = int_to_ptr.vmem [resolvable:$true] %s314_s22 }
   0xe   :  { %s390_s7 = scalar_lea.vmem %s315_s22, 16  ;;  %s394_s23 = scalar_lea.vmem %s315_s22, 32 }
   0xf   :  { %p391_p0 = scmp.ne.s32.totalorder %s315_s22, %s390_s7  ;;  %p395_p1 = scmp.lt.s32.totalorder %s315_s22, %s315_s22 }
  0x10   :  { %p396_p2 = scmp.lt.s32.totalorder %s394_s23, %s390_s7 }
  0x12   :  { %p397_p3 = por %p396_p2, %p395_p1 }
  0x14   :  { %p398_p4 = pnand %p397_p3, %p391_p0 }
  0x8b   :  { %v248_v51 = vpop.permute.xlu0 %247 }
  0x8c   :  { %v253_v52 = vrot.slane %v248_v51, %v252_v50 }
  0xdb   :  { %v91_v8 = vpop.f32.mrb[0].mxu0 }
  0xdc   :  { %v92_v9 = vadd.f32 %v322_v7, %v91_v8  ;;  %v349_v10 = vpop.f32.mrb[1].mxu0 }
  0xdd   :  { %v94_v11 = vpop.f32.mrb[2].mxu0 }
  0xde   :  { %v98_v12 = vmul.f32 1.442695, %v92_v9  ;;  %v350_v13 = vpop.f32.mrb[3].mxu0  ;;  %vm97_vm2 = vcmp.gt.f32.partialorder %v92_v9, 0.0 }
  0xe0   :  { %380 = vpow2.f32 %v98_v12 }
  0xea   :  { %v381_v14 = vpop.eup %380 }
  0xeb   :  { %v325_v15 = vadd.f32 -1.0, %v381_v14 }
  0xed   :  { %v101_v16 = vmul.f32 0.2, %v325_v15 }
  0xef   :  { %v102_v17 = vsel %vm97_vm2, %v92_v9, %v101_v16 }
  0xf0   :  { %v103_v18 = vpack.c.bf16 %v102_v17, %v102_v17 }
  0xf2   :  { %356 = vmatmul.mubr.msk.bf16.vlgmr.msra.gmra.mrb[0].mxu1 %vm127_vm3, %v103_v18 }
  0xf3   :  { %367 = vmatprep.mubr.msk.bf16.mxu1 %vm415_vm1, %v414_v2 }
 0x1c5   :  { %v165_v21 = vpop.f32.mrb[0].mxu1 }
 0x1c6   :  { %v166_v22 = vadd.f32 %v326_v20, %v165_v21  ;;  %v357_v23 = vpop.f32.mrb[1].mxu1 }
 0x1c7   :  { %v168_v24 = vpop.f32.mrb[2].mxu1 }
 0x1c8   :  { %v172_v25 = vmul.f32 1.442695, %v166_v22  ;;  %v358_v26 = vpop.f32.mrb[3].mxu1  ;;  %vm171_vm4 = vcmp.gt.f32.partialorder %v166_v22, 0.0 }
 0x1ca   :  { %382 = vpow2.f32 %v172_v25 }
 0x1d4   :  { %v383_v27 = vpop.eup %382 }
 0x1d5   :  { %v330_v28 = vadd.f32 -1.0, %v383_v27 }
 0x1d7   :  { %v175_v29 = vmul.f32 0.2, %v330_v28 }
 0x1d9   :  { %v176_v30 = vsel %vm171_vm4, %v166_v22, %v175_v29 }
 0x1da   :  { %v177_v31 = vpack.c.bf16 %v176_v30, %v176_v30 }
 0x1dc   :  { %362 = vmatmul.mubr.msk.bf16.vlgmr.msra.gmra.mrb[4].mxu0 %vm53_vm0, %v177_v31 }
 0x2af   :  { %v230_v35 = vpop.f32.mrb[4].mxu0 }
 0x2b0   :  { %v231_v36 = vadd.f32 %v331_v34, %v230_v35  ;;  %v363_v37 = vpop.f32.mrb[5].mxu0 }
 0x2b1   :  { %v233_v38 = vpop.f32.mrb[6].mxu0 }
 0x2b2   :  { %v237_v39 = vmul.f32 1.442695, %v231_v36  ;;  %v364_v40 = vpop.f32.mrb[7].mxu0  ;;  %vm236_vm5 = vcmp.gt.f32.partialorder %v231_v36, 0.0 }
 0x2b4   :  { %384 = vpow2.f32 %v237_v39 }
 0x2be   :  { %v385_v41 = vpop.eup %384 }
 0x2bf   :  { %v334_v42 = vadd.f32 -1.0, %v385_v41 }
 0x2c1   :  { %v240_v43 = vmul.f32 0.2, %v334_v42 }
 0x2c3   :  { %v241_v44 = vsel %vm236_vm5, %v231_v36, %v240_v43 }
 0x2c4   :  { %v243_v45 = vpack.c.bf16 %v241_v44, %v241_v44 }
 0x2c6   :  { %v259_v46 = vsel %vm254_vm6, %v243_v45, 0 }
 0x2c7   :  { %366 = vmatpush3.bf16.xpose.msra.mxu1 %v259_v46 }
 0x2ce   :  { %368 = vmatmul.mubr.msk.bf16.vlgmr.msra.gmra.mrb[4].mxu1 %vm254_vm6, %v242_v47 }
 0x3a1   :  { %v295_v53 = vpop.f32.mrb[4].mxu1 }
 0x3a2   :  { %v296_v54 = vadd.f32 %v295_v53, %v253_v52  ;;  %v369_v55 = vpop.f32.mrb[5].mxu1 }
 0x3a3   :  { %v298_v56 = vpop.f32.mrb[6].mxu1 }
 0x3a4   :  { %v301_v57 = vsub.f32 0.0, %v296_v54  ;;  %v370_v58 = vpop.f32.mrb[7].mxu1 }
 0x3a6   :  { %v302_v59 = vmul.f32 1.442695, %v301_v57 }
 0x3a8   :  { %386 = vpow2.f32 %v302_v59 }
 0x3b2   :  { %v387_v60 = vpop.eup %386 }
 0x3b3   :  { %v304_v61 = vadd.f32 1.0, %v387_v60 }
 0x3b5   :  { %388 = vrcp.f32 %v304_v61 }
 0x3bf   :  { %v389_v62 = vpop.eup %388 }
 0x3c0   :  { %307 = vst.msk [vmem:[#allocation3] sm:$0x1] %vm306_vm7, %v389_v62 }
 0x3c1   :  { %401 = shalt.err (!%p398_p4)
}
 0x3c2   :  { %s402_s26 = scalar_lea.hbm %s525_s9, 16 }
 0x3c3   :  { %p403_p5 = scmp.ne.s32.totalorder %s525_s9, %s402_s26  ;;  %p406_p6 = scmp.lt.u32.totalorder %s402_s26, %s525_s9 }
 0x3c5   :  { %p408_p7 = pnand %p406_p6, %p403_p5 }
 0x3c7   :  { %411 = shalt.err (!%p408_p7)
}
 0x3c8   :  { %317 = dma.vmem_to_hbm [thread:$0]  %s315_s22, 16, %s525_s9, [#allocation4]  }
 0x3c9   :  { %412 = dma.done.wait [#allocation4], 16  }
 0x3ca   :  { %413 = vsyncadd [#allocation4], 4294967280 }
 0x3cb   :  { %321 = vsyncpa [#allocation4], 1 }

</bundles_post_ra>
